<compile_context>
chip_gen: v7x
topology: tpu7x:2x2x1
jax: 0.10.0
libtpu: 0.0.40
codegen_flags: <defaults>
</compile_context>

<pallas_src>
import jax
import jax.numpy as jnp
from jax.experimental import pallas as pl
from jax.experimental.pallas import tpu as pltpu


def _round_up(n, m):
    return ((n + m - 1) // m) * m


def _silu_f32(v):
    # v * sigmoid(v); exp and reciprocal occupy the EUP slot (free in a
    # mem/store-bound kernel).  approx=False keeps full f32 accuracy.
    return v * pl.reciprocal(1.0 + jnp.exp(-v), approx=False)


def _make_kernel(emb_dim, hid_dim, out_dim, r_b1, r_w2, r_b2):
    def kernel(x_ref, t_ref, p_ref, o_ref):
        t_blk = t_ref[...].astype(jnp.float32)

        # Static slices into the packed, VMEM-resident parameter buffer
        # (offsets are 8-sublane aligned).
        w1 = p_ref[0:emb_dim, 0:hid_dim]
        b1 = p_ref[r_b1:r_b1 + 1, 0:hid_dim]
        w2 = p_ref[r_w2:r_w2 + hid_dim, 0:out_dim]
        b2 = p_ref[r_b2:r_b2 + 1, 0:out_dim]

        # Linear1 + SiLU (MXU, f32 accumulation).
        h = jnp.dot(t_blk, w1, preferred_element_type=jnp.float32) + b1
        h = _silu_f32(h)

        # Linear2.
        t_emb = jnp.dot(h, w2, preferred_element_type=jnp.float32) + b2

        # Residual add + SiLU; store in the I/O dtype.
        y = x_ref[...].astype(jnp.float32) + t_emb
        o_ref[...] = _silu_f32(y).astype(o_ref.dtype)

    return kernel


def time_mlp(x, t, w1, b1, w2, b2, *, block_b=1024, io_dtype=None):
    """TimeMLP forward.  x: (B, out_dim), t: (B, emb_dim) -> (B, out_dim).

    Weights are stored transposed vs. PyTorch: w1 (emb, hid), w2 (hid, out);
    biases are 1-D or (1, dim).
    """
    B, out_dim = x.shape
    emb_dim, hid_dim = w1.shape
    assert t.shape == (B, emb_dim)
    assert w2.shape == (hid_dim, out_dim)

    if io_dtype is not None:  # bf16 I/O on v6e/v7x halves streamed HBM bytes.
        x = x.astype(io_dtype)
        t = t.astype(io_dtype)

    # ---- pack the tiny parameters into one resident buffer (single DMA) ----
    width = max(hid_dim, out_dim)
    r_b1 = _round_up(emb_dim, 8)
    r_w2 = r_b1 + 8
    r_b2 = r_w2 + _round_up(hid_dim, 8)
    n_rows = r_b2 + 8
    params = jnp.zeros((n_rows, width), jnp.float32)
    params = params.at[0:emb_dim, 0:hid_dim].set(w1.astype(jnp.float32))
    params = params.at[r_b1, 0:hid_dim].set(
        jnp.reshape(b1, (-1,)).astype(jnp.float32))
    params = params.at[r_w2:r_w2 + hid_dim, 0:out_dim].set(
        w2.astype(jnp.float32))
    params = params.at[r_b2, 0:out_dim].set(
        jnp.reshape(b2, (-1,)).astype(jnp.float32))

    # ---- batch tiling -------------------------------------------------------
    tb = min(block_b, B)          # tb == B (full dim) or a multiple of 8
    grid = (pl.cdiv(B, tb),)

    kernel = _make_kernel(emb_dim, hid_dim, out_dim, r_b1, r_w2, r_b2)

    return pl.pallas_call(
        kernel,
        out_shape=jax.ShapeDtypeStruct((B, out_dim), x.dtype),
        grid=grid,
        in_specs=[
            pl.BlockSpec((tb, out_dim), lambda i: (i, 0)),    # x  (streamed)
            pl.BlockSpec((tb, emb_dim), lambda i: (i, 0)),    # t  (streamed)
            pl.BlockSpec((n_rows, width), lambda i: (0, 0)),  # params (resident)
        ],
        out_specs=pl.BlockSpec((tb, out_dim), lambda i: (i, 0)),
        compiler_params=pltpu.CompilerParams(
            dimension_semantics=("parallel",),   # megacore splits batch on v7x
        ),
    )(x, t, params)


def reference(x, t, w1, b1, w2, b2):
    h = jax.nn.silu(t @ w1 + jnp.reshape(b1, (1, -1)))
    t_emb = h @ w2 + jnp.reshape(b2, (1, -1))
    return jax.nn.silu(x + t_emb)


if __name__ == "__main__":
    # Small shapes consistent with the module: embedding_dim=16, hidden_dim=32,
    # out_dim=16.
    emb_dim, hid_dim, out_dim = 16, 32, 16

    key = jax.random.PRNGKey(0)
    kx, kt, kw1, kb1, kw2, kb2 = jax.random.split(key, 6)

    w1 = jax.random.normal(kw1, (emb_dim, hid_dim), dtype=jnp.float32) * 0.1
    b1 = jax.random.normal(kb1, (1, hid_dim), dtype=jnp.float32) * 0.1
    w2 = jax.random.normal(kw2, (hid_dim, out_dim), dtype=jnp.float32) * 0.1
    b2 = jax.random.normal(kb2, (1, out_dim), dtype=jnp.float32) * 0.1

    # --- test 1: tiny batch (single grid step) ------------------------------
    B = 8
    x = jax.random.normal(kx, (B, out_dim), dtype=jnp.float32)
    t = jax.random.normal(kt, (B, emb_dim), dtype=jnp.float32)
    out = time_mlp(x, t, w1, b1, w2, b2)
    jax.block_until_ready(out)
    ref = reference(x, t, w1, b1, w2, b2)
    assert out.shape == (B, out_dim)
    assert jnp.allclose(out, ref, atol=1e-5, rtol=1e-5), "mismatch (B=8)"

    # --- test 2: multi-block grid over batch --------------------------------
    B2 = 256
    x2 = jax.random.normal(kx, (B2, out_dim), dtype=jnp.float32)
    t2 = jax.random.normal(kt, (B2, emb_dim), dtype=jnp.float32)
    out2 = time_mlp(x2, t2, w1, b1, w2, b2, block_b=64)   # grid of 4
    jax.block_until_ready(out2)
    ref2 = reference(x2, t2, w1, b1, w2, b2)
    assert out2.shape == (B2, out_dim)
    assert jnp.allclose(out2, ref2, atol=1e-5, rtol=1e-5), "mismatch (grid)"

    # --- test 3: bf16 I/O path (v6e/v7x bandwidth option), loose tolerance ---
    out3 = time_mlp(x2, t2, w1, b1, w2, b2, block_b=64, io_dtype=jnp.bfloat16)
    jax.block_until_ready(out3)
    assert out3.dtype == jnp.bfloat16
    assert jnp.allclose(out3.astype(jnp.float32), ref2, atol=5e-2, rtol=5e-2), \
        "mismatch (bf16 I/O)"

    # TODO(synk): at these tiny static shapes the real win is fusing TimeMLP
    # into the neighbouring diffusion-block kernel rather than a standalone
    # pallas_call; kept standalone here per the module boundary.
    print("KERNEL_OK")
</pallas_src>

<mosaic_0001>
module attributes {stable_mosaic.version = 11 : i64} {
  func.func @kernel(%arg0: i32, %arg1: memref<8x16xf32, #tpu.memory_space<vmem>>, %arg2: memref<8x16xf32, #tpu.memory_space<vmem>>, %arg3: memref<64x32xf32, #tpu.memory_space<vmem>>, %arg4: memref<8x16xf32, #tpu.memory_space<vmem>>) attributes {dimension_semantics = [#tpu.dimension_semantics<parallel>], iteration_bounds = array<i64: 1>, scalar_prefetch = 0 : i64, scratch_operands = 0 : i64, tpu.core_type = #tpu.core_type<tc>, window_params = [{transform_indices = @transform_0, window_bounds = array<i64: 8, 16>}, {transform_indices = @transform_1, window_bounds = array<i64: 8, 16>}, {pipeline_mode = #tpu.pipeline_mode<synchronous>, transform_indices = @transform_2, window_bounds = array<i64: 64, 32>}, {transform_indices = @transform_3, window_bounds = array<i64: 8, 16>}]} {
    %c0 = arith.constant 0 : index
    %c0_0 = arith.constant 0 : index
    %0 = vector.load %arg2[%c0, %c0_0] : memref<8x16xf32, #tpu.memory_space<vmem>>, vector<8x16xf32>
    %c0_1 = arith.constant 0 : index
    %c0_2 = arith.constant 0 : index
    %1 = vector.load %arg3[%c0_1, %c0_2] : memref<64x32xf32, #tpu.memory_space<vmem>>, vector<16x32xf32>
    %c16 = arith.constant 16 : index
    %c0_3 = arith.constant 0 : index
    %2 = vector.load %arg3[%c16, %c0_3] : memref<64x32xf32, #tpu.memory_space<vmem>>, vector<1x32xf32>
    %c24 = arith.constant 24 : index
    %c0_4 = arith.constant 0 : index
    %3 = vector.load %arg3[%c24, %c0_4] : memref<64x32xf32, #tpu.memory_space<vmem>>, vector<32x16xf32>
    %c56 = arith.constant 56 : index
    %c0_5 = arith.constant 0 : index
    %4 = vector.load %arg3[%c56, %c0_5] : memref<64x32xf32, #tpu.memory_space<vmem>>, vector<1x16xf32>
    %cst = arith.constant dense<0.000000e+00> : vector<8x32xf32>
    %5 = tpu.matmul %0, %1, %cst {dimension_numbers = #tpu.dot_dimension_numbers<[1], [0], [0], [1], [0, 0, 1, 1], [], []>} : vector<8x16xf32>, vector<16x32xf32>, vector<8x32xf32> -> vector<8x32xf32>
    %6 = vector.broadcast %2 : vector<1x32xf32> to vector<8x32xf32>
    %7 = arith.addf %5, %6 : vector<8x32xf32>
    %cst_6 = arith.constant 0.000000e+00 : f32
    %8 = vector.broadcast %cst_6 : f32 to vector<8x32xf32>
    %9 = arith.subf %8, %7 : vector<8x32xf32>
    %10 = math.exp %9 : vector<8x32xf32>
    %cst_7 = arith.constant 1.000000e+00 : f32
    %11 = vector.broadcast %cst_7 : f32 to vector<8x32xf32>
    %12 = arith.addf %11, %10 : vector<8x32xf32>
    %13 = tpu.reciprocal %12 : vector<8x32xf32> -> vector<8x32xf32>
    %14 = arith.mulf %7, %13 : vector<8x32xf32>
    %cst_8 = arith.constant dense<0.000000e+00> : vector<8x16xf32>
    %15 = tpu.matmul %14, %3, %cst_8 {dimension_numbers = #tpu.dot_dimension_numbers<[1], [0], [0], [1], [0, 0, 1, 1], [], []>} : vector<8x32xf32>, vector<32x16xf32>, vector<8x16xf32> -> vector<8x16xf32>
    %16 = vector.broadcast %4 : vector<1x16xf32> to vector<8x16xf32>
    %17 = arith.addf %15, %16 : vector<8x16xf32>
    %c0_9 = arith.constant 0 : index
    %c0_10 = arith.constant 0 : index
    %18 = vector.load %arg1[%c0_9, %c0_10] : memref<8x16xf32, #tpu.memory_space<vmem>>, vector<8x16xf32>
    %19 = arith.addf %18, %17 : vector<8x16xf32>
    %cst_11 = arith.constant 0.000000e+00 : f32
    %20 = vector.broadcast %cst_11 : f32 to vector<8x16xf32>
    %21 = arith.subf %20, %19 : vector<8x16xf32>
    %22 = math.exp %21 : vector<8x16xf32>
    %cst_12 = arith.constant 1.000000e+00 : f32
    %23 = vector.broadcast %cst_12 : f32 to vector<8x16xf32>
    %24 = arith.addf %23, %22 : vector<8x16xf32>
    %25 = tpu.reciprocal %24 : vector<8x16xf32> -> vector<8x16xf32>
    %26 = arith.mulf %19, %25 : vector<8x16xf32>
    %c0_13 = arith.constant 0 : index
    %c0_14 = arith.constant 0 : index
    %27 = vector.load %arg4[%c0_13, %c0_14] : memref<8x16xf32, #tpu.memory_space<vmem>>, vector<8x16xf32>
    tpu.vector_store %arg4[%c0_13, %c0_14], %26 {strides = array<i32>} : memref<8x16xf32, #tpu.memory_space<vmem>>, vector<8x16xf32>,
    return
  }
  func.func @transform_0(%arg0: i32) -> (i32, i32) {
    %c0_i32 = arith.constant 0 : i32
    %c0_i32_0 = arith.constant 0 : i32
    return %arg0, %c0_i32 : i32, i32
  }
  func.func @transform_1(%arg0: i32) -> (i32, i32) {
    %c0_i32 = arith.constant 0 : i32
    %c0_i32_0 = arith.constant 0 : i32
    return %arg0, %c0_i32 : i32, i32
  }
  func.func @transform_2(%arg0: i32) -> (i32, i32) {
    %c0_i32 = arith.constant 0 : i32
    %c0_i32_0 = arith.constant 0 : i32
    %c0_i32_1 = arith.constant 0 : i32
    return %c0_i32, %c0_i32_0 : i32, i32
  }
  func.func @transform_3(%arg0: i32) -> (i32, i32) {
    %c0_i32 = arith.constant 0 : i32
    %c0_i32_0 = arith.constant 0 : i32
    return %arg0, %c0_i32 : i32, i32
  }
}

</mosaic_0001>

<bundles_post_ra>
// kernel: tpu_custom_call.1
= control target key start
LH: loop header
LB: loop body
LE: loop exit
PB: predicated region body
PF: predicated region fallthrough
CT: control target
= control target key end

     0   :  { %v284_v2 = vmov 0.0|0.0   ;;  %vm285_vm0 = vmmov 0   ;;  %v286_v4 = vmov 0.0   ;;  %s352_s0 = inlined_call_operand.vmem [shape: f32[8,16], index: 0, kind: input, shape index: {}]   ;;  %s353_s1 = inlined_call_operand.vmem [shape: f32[8,16], index: 1, kind: input, shape index: {}]   ;;  %s354_s2 = inlined_call_operand.vmem [shape: f32[64,32], index: 2, kind: input, shape index: {}]   ;;  %s355_s3 = inlined_call_operand.hbm [shape: f32[8,16], index: 3, kind: output, shape index: {}]  }
   0x1   :  { %v16_v0 = vld [vmem:[%s354_s2] sm:$0xff]  ;;  %v17_v1 = vld [vmem:[%s354_s2 + $0x8] sm:$0xff]  ;;  %239 = vmatprep.subr.bf16.mxu0 %v284_v2  ;;  %225 = vmatprep.mubr.msk.f32.mxu0 %vm285_vm0, %v286_v4 }
   0x2   :  { %v240_v3 = vpack.c.bf16 %v17_v1, %v16_v0 }
   0x3   :  { %8 = vsyncpa [#allocation3], 0  ;;  %242 = vmatprep.subr.bf16.mxu1 %v284_v2  ;;  %236 = vmatprep.mubr.msk.f32.mxu1 %vm285_vm0, %v286_v4  ;;  %v15_v5 = vld [vmem:[%s353_s1] sm:$0xff]  ;;  %vm28_vm1 = vcmask 130048   ;;  %v19_v6 = vld [vmem:[%s354_s2 + $0x18] sm:$0xff]  ;;  %vm112_vm2 = vcmask 261120  }
   0x4   :  { %241 = vmatpush3.bf16.msra.mxu0 %v240_v3  ;;  %v20_v7 = vld [vmem:[%s354_s2 + $0x20] sm:$0xff]  ;;  %v21_v9 = vld [vmem:[%s354_s2 + $0x28] sm:$0xff]  ;;  %v22_v10 = vld [vmem:[%s354_s2 + $0x30] sm:$0xff]  ;;  %s287_s4 = smov [#allocation2]  }
   0x5   :  { %v243_v8 = vpack.c.bf16 %v20_v7, %v19_v6  ;;  %v246_v11 = vpack.c.bf16 %v22_v10, %v21_v9  ;;  %v209_v12 = vld [vmem:[%s354_s2 + $0x10] ss:$0 sm:$0xff]  ;;  %v211_v22 = vld [vmem:[%s354_s2 + $0x38] ss:$0 sm:$0xff]  ;;  %v186_v24 = vld [vmem:[%s352_s0] sm:$0xff]  ;;  %s201_s5 = sshll.u32 %s287_s4, 4  ;;  %s202_s5 = int_to_ptr.vmem [resolvable:$true] %s201_s5 }
   0x6   :  { %s260_s2 = scalar_lea.vmem %s202_s5, 128  ;;  %p265_p1 = scmp.lt.s32.totalorder %s202_s5, %s202_s5 }
   0x7   :  { %226 = vmatmul.mubr.msk.f32.vlgmr.msra.gmra.mrb[0].mxu0 %vm28_vm1, %v15_v5  ;;  %244 = vmatpush3.bf16.msra.mxu1 %v243_v8  ;;  %p261_p0 = scmp.ne.s32.totalorder %s202_s5, %s260_s2  ;;  %p266_p2 = scmp.lt.s32.totalorder %s260_s2, %s260_s2 }
   0x8   :  { %245 = vmatprep.subr.bf16.mxu1 %v284_v2 }
   0x9   :  { %p267_p3 = por %p266_p2, %p265_p1 }
   0xb   :  { %247 = vmatpush3.bf16.msra.mxu1 %v246_v11  ;;  %p268_p4 = pnand %p267_p3, %p261_p0 }
  0xda   :  { %v98_v13 = vpop.f32.mrb[0].mxu0 }
  0xdb   :  { %v99_v14 = vadd.f32 %v209_v12, %v98_v13  ;;  %v227_v15 = vpop.f32.mrb[1].mxu0 }
  0xdd   :  { %v102_v16 = vsub.f32 0.0, %v99_v14 }
  0xdf   :  { %v103_v17 = vmul.f32 1.442695, %v102_v16 }
  0xe1   :  { %252 = vpow2.f32 %v103_v17 }
  0xeb   :  { %v253_v18 = vpop.eup %252 }
  0xec   :  { %v105_v19 = vadd.f32 1.0, %v253_v18 }
  0xee   :  { %254 = vrcp.f32 %v105_v19 }
  0xf8   :  { %v255_v20 = vpop.eup %254 }
  0xf9   :  { %v107_v21 = vmul.f32 %v255_v20, %v99_v14 }
  0xfb   :  { %237 = vmatmul.mubr.msk.f32.vlgmr.msra.gmra.mrb[0].mxu1 %vm112_vm2, %v107_v21 }
 0x1ce   :  { %v182_v23 = vpop.f32.mrb[0].mxu1 }
 0x1cf   :  { %v183_v25 = vadd.f32 %v211_v22, %v182_v23  ;;  %v238_v26 = vpop.f32.mrb[1].mxu1 }
 0x1d1   :  { %v187_v27 = vadd.f32 %v186_v24, %v183_v25 }
 0x1d3   :  { %v188_v28 = vsub.f32 0.0, %v187_v27 }
 0x1d5   :  { %v189_v29 = vmul.f32 1.442695, %v188_v28 }
 0x1d7   :  { %256 = vpow2.f32 %v189_v29 }
 0x1e1   :  { %v257_v30 = vpop.eup %256 }
 0x1e2   :  { %v191_v31 = vadd.f32 1.0, %v257_v30 }
 0x1e4   :  { %258 = vrcp.f32 %v191_v31 }
 0x1ee   :  { %v259_v32 = vpop.eup %258 }
 0x1ef   :  { %v193_v33 = vmul.f32 %v259_v32, %v187_v27 }
 0x1f1   :  { %194 = vst.msk [vmem:[#allocation2] sm:$0xff] %vm28_vm1, %v193_v33 }
 0x1f2   :  { %271 = shalt.err (!%p268_p4)
}
 0x1f3   :  { %s272_s7 = scalar_lea.hbm %s355_s3, 128 }
 0x1f4   :  { %p273_p5 = scmp.ne.s32.totalorder %s355_s3, %s272_s7  ;;  %p276_p6 = scmp.lt.u32.totalorder %s272_s7, %s355_s3 }
 0x1f6   :  { %p278_p7 = pnand %p276_p6, %p273_p5 }
 0x1f8   :  { %281 = shalt.err (!%p278_p7)
}
 0x1f9   :  { %204 = dma.vmem_to_hbm [thread:$0]  %s202_s5, 128, %s355_s3, [#allocation3]  }
 0x1fa   :  { %282 = dma.done.wait [#allocation3], 128  }
 0x1fb   :  { %283 = vsyncadd [#allocation3], 4294967168 }
 0x1fc   :  { %208 = vsyncpa [#allocation3], 1 }

</bundles_post_ra>
